<compile_context>
chip_gen: v5e
topology: v5e:2x2
jax: 0.10.0
libtpu: 0.0.40
codegen_flags: <defaults>
</compile_context>

<pallas_src>
import functools

import jax
import jax.numpy as jnp
from jax.experimental import pallas as pl
from jax.experimental.pallas import tpu as pltpu


def _round_up(x: int, m: int) -> int:
    return ((x + m - 1) // m) * m


def _usable_vmem_bytes() -> int:
    # Per-generation VMEM budget: ~7/8 of physical capacity (≈112 MiB on
    # v5e/v6e's 128 MiB, ≈56 MiB on v7x's 64 MiB per TC).
    try:
        cap = int(pltpu.get_tpu_info().vmem_capacity_bytes)
    except Exception:
        cap = 64 << 20                        # conservative fallback (v7x per-TC)
    return (cap * 7) // 8


def _layerdiff_rms_kernel(x_ref, w1_ref, b1_ref, w2_ref, b2_ref,
                          out_ref, ssq_ref, *, m_valid: int):
    # x_ref  : (TM, Hp) f32 token tile (streamed, double-buffered)
    # w1_ref : (Hp, Hp) bf16 hooked-Linear weight (in x out, resident, 1 buffer)
    # b1_ref : (1, Hp)  f32 (resident, 1 buffer)
    # w2_ref : (Hp, Hp) bf16 (resident, 1 buffer)
    # b2_ref : (1, Hp)  f32 (resident, 1 buffer)
    # out_ref: (TM, Hp) f32 model-output tile (streamed)
    # ssq_ref: (1, Hp)  f32 per-tile, per-lane partial sum of squared diffs
    i = pl.program_id(0)
    n = pl.num_programs(0)
    tm = x_ref.shape[0]

    x = x_ref[...]                                            # f32 (TM, Hp)

    # --- hooked layer: Linear(H, H); bf16 operands, f32 accumulation ---
    h = jnp.dot(x.astype(jnp.bfloat16), w1_ref[...],
                preferred_element_type=jnp.float32) + b1_ref[...]

    # --- forward hook: per-tile partial SSQ, token-axis reduction only.
    # Cross-lane + cross-tile reduction happens once in the wrapper, so the
    # grid axis carries no accumulator (can be "parallel" -> both v7x TCs)
    # and no full XLU reduce runs per step.
    def _emit_ssq(diff):
        ssq_ref[...] = jnp.sum(diff * diff, axis=0, keepdims=True)

    if m_valid % tm == 0:
        _emit_ssq(h - x)                      # no padded token rows anywhere
    else:
        @pl.when(i == n - 1)
        def _last():                          # only the final tile has padding
            row = jax.lax.broadcasted_iota(jnp.int32, (tm, 1), 0) + i * tm
            _emit_ssq(jnp.where(row < m_valid, h - x, 0.0))

        @pl.when(i != n - 1)
        def _bulk():
            _emit_ssq(h - x)

    # --- rest of the model: ReLU -> Linear(H, H) ---
    a = jnp.maximum(h, 0.0).astype(jnp.bfloat16)
    y = jnp.dot(a, w2_ref[...],
                preferred_element_type=jnp.float32) + b2_ref[...]
    out_ref[...] = y.astype(out_ref.dtype)


def layerdiff_rms_forward(x2d, w1, b1, w2, b2):
    """x2d: (M, H) f32.  w1/w2: (Hp, Hp) bf16, b1/b2: (1, Hp) f32 (lane-padded).
    Returns (out (M, H) f32, rms device scalar f32)."""
    M, H = x2d.shape
    Hp = w1.shape[0]

    usable_vmem = _usable_vmem_bytes()

    # VMEM model (bytes): single-buffered resident bf16 weights + f32 biases,
    # double-buffered f32 x/out tiles, ~6 f32 (TM,Hp) intermediates, headroom.
    weight_bytes = 2 * Hp * Hp * 2 + 2 * Hp * 4

    def act_bytes(tm):
        return 2 * 2 * tm * Hp * 4 + 6 * tm * Hp * 4

    headroom = 4 << 20
    # TM chosen from Hp and the chip's VMEM budget, not just from M.
    for cand in (512, 256, 128):
        if weight_bytes + act_bytes(cand) + headroom <= usable_vmem:
            TM = cand
            break
    else:
        # TODO(synk): once the 2*Hp^2 bf16 weight pair no longer fits VMEM
        # (Hp >~3k on v7x, >~5k on v5e/v6e), add an N-tiled weight path that
        # streams (Hp, TN) column tiles instead of whole-matrix residency.
        TM = 128

    TM = min(TM, _round_up(max(M, 1), 128))
    M_pad = _round_up(M, TM)
    grid_m = M_pad // TM

    if M_pad != M or Hp != H:
        x_pad = jnp.pad(x2d, ((0, M_pad - M), (0, Hp - H)))
    else:
        x_pad = x2d

    vmem_limit = int(min(usable_vmem,
                         max(32 << 20,
                             weight_bytes + act_bytes(TM) + (8 << 20))))

    cost = pl.CostEstimate(
        flops=4 * M_pad * Hp * Hp,                    # two (M,Hp)x(Hp,Hp) matmuls
        transcendentals=0,
        bytes_accessed=(2 * M_pad * Hp * 4            # x in + out (f32)
                        + 2 * Hp * Hp * 2             # bf16 weights, read once
                        + 2 * Hp * 4                  # biases
                        + grid_m * Hp * 4),           # SSQ partials
    )

    kernel = functools.partial(_layerdiff_rms_kernel, m_valid=M)

    def build(weight_buffers: int):
        # Constant-index_map operands: single pipeline buffer (they are DMA'd
        # once and never change), halving resident weight VMEM.
        const_kw = ({'pipeline_mode': pl.Buffered(buffer_count=1)}
                    if weight_buffers == 1 else {})
        return pl.pallas_call(
            kernel,
            out_shape=(
                jax.ShapeDtypeStruct((M_pad, Hp), x2d.dtype),
                jax.ShapeDtypeStruct((1, grid_m * Hp), jnp.float32),
            ),
            grid=(grid_m,),
            in_specs=[
                pl.BlockSpec((TM, Hp), lambda i: (i, 0)),           # x tiles
                pl.BlockSpec((Hp, Hp), lambda i: (0, 0), **const_kw),  # w1 bf16
                pl.BlockSpec((1, Hp), lambda i: (0, 0), **const_kw),   # b1
                pl.BlockSpec((Hp, Hp), lambda i: (0, 0), **const_kw),  # w2 bf16
                pl.BlockSpec((1, Hp), lambda i: (0, 0), **const_kw),   # b2
            ],
            out_specs=(
                pl.BlockSpec((TM, Hp), lambda i: (i, 0)),           # out tiles
                pl.BlockSpec((1, Hp), lambda i: (0, i)),            # SSQ partials
            ),
            compiler_params=pltpu.CompilerParams(
                # No carried accumulator anymore -> token axis is parallel
                # (sharded across both TCs on v7x).
                dimension_semantics=("parallel",),
                vmem_limit_bytes=vmem_limit,
            ),
            cost_estimate=cost,
        )

    try:
        out, ssq = build(1)(x_pad, w1, b1, w2, b2)
    except Exception:
        # Fallback if this JAX build rejects single-buffered pipeline_mode.
        out, ssq = build(2)(x_pad, w1, b1, w2, b2)

    # Hook finalize in the wrapper: padded lanes contribute exactly 0 and
    # padded rows are masked in-kernel, so divide by the true M*H.
    rms = jnp.sqrt(jnp.sum(ssq) / (M * H))
    return out[:M, :H], rms


class LayerDiffRMS:
    """JAX/Pallas analogue of the PyTorch LayerDiffRMS wrapper.

    The wrapped "model" (Linear -> ReLU -> Linear) and the forward hook on the
    first Linear are fused into one Pallas kernel; forward(x) returns model(x)
    and stashes the hook's RMS as a device scalar (convert lazily via .rms).
    """

    def __init__(self, hidden: int, key):
        k1, k2, k3, k4 = jax.random.split(key, 4)
        scale = 1.0 / float(hidden) ** 0.5
        hp = _round_up(hidden, 128)                       # lane-dense hidden dim
        wpad = ((0, hp - hidden), (0, hp - hidden))
        bpad = ((0, 0), (0, hp - hidden))

        # PyTorch nn.Linear stores weight as (out, in); keep (in, out) so the
        # kernel does x @ W directly.  Weights stored bf16 (MXU operands);
        # biases stay f32 (added after f32 accumulation).
        w1 = jax.random.uniform(k1, (hidden, hidden), jnp.float32, -scale, scale)
        b1 = jax.random.uniform(k2, (1, hidden), jnp.float32, -scale, scale)
        w2 = jax.random.uniform(k3, (hidden, hidden), jnp.float32, -scale, scale)
        b2 = jax.random.uniform(k4, (1, hidden), jnp.float32, -scale, scale)

        self.w1 = jnp.pad(w1, wpad).astype(jnp.bfloat16)
        self.b1 = jnp.pad(b1, bpad)
        self.w2 = jnp.pad(w2, wpad).astype(jnp.bfloat16)
        self.b2 = jnp.pad(b2, bpad)
        self.hidden = hidden
        self.hidden_padded = hp
        self._rms = None                                  # device scalar

    def forward(self, x):
        # x: (batch, seq, hidden) -> flatten tokens for the kernel.
        batch, seq, hidden = x.shape
        x2d = x.reshape(batch * seq, hidden)
        out2d, rms = layerdiff_rms_forward(x2d, self.w1, self.b1,
                                           self.w2, self.b2)
        self._rms = rms            # keep on device; no host sync per forward
        return out2d.reshape(batch, seq, hidden)

    @property
    def rms(self):
        return None if self._rms is None else float(self._rms)


if __name__ == "__main__":
    key = jax.random.PRNGKey(0)
    k_param, k_x = jax.random.split(key)

    batch, seq, hidden = 2, 8, 32
    module = LayerDiffRMS(hidden, k_param)
    x = jax.random.normal(k_x, (batch, seq, hidden), jnp.float32)

    out = module.forward(x)
    out = jax.block_until_ready(out)
    jax.block_until_ready(module._rms)

    # Pure-JAX reference with identical bf16-operand / f32-accum numerics.
    hp = module.hidden_padded
    x2d = x.reshape(batch * seq, hidden)
    x_padc = jnp.pad(x2d, ((0, 0), (0, hp - hidden)))
    h_ref = jnp.dot(x_padc.astype(jnp.bfloat16), module.w1,
                    preferred_element_type=jnp.float32) + module.b1
    diff_ref = h_ref - x_padc                       # padded lanes are exactly 0
    rms_ref = float(jnp.sqrt(jnp.sum(diff_ref * diff_ref)
                             / (x2d.shape[0] * hidden)))
    a_ref = jnp.maximum(h_ref, 0.0).astype(jnp.bfloat16)
    out_ref = (jnp.dot(a_ref, module.w2, preferred_element_type=jnp.float32)
               + module.b2)[:, :hidden]

    assert jnp.allclose(out.reshape(-1, hidden), out_ref, atol=1e-3, rtol=1e-3), \
        float(jnp.max(jnp.abs(out.reshape(-1, hidden) - out_ref)))
    assert abs(module.rms - rms_ref) < 1e-3, (module.rms, rms_ref)

    print("KERNEL_OK")
</pallas_src>

<mosaic_0001>
module attributes {stable_mosaic.version = 11 : i64} {
  func.func @_layerdiff_rms_kernel(%arg0: i32, %arg1: memref<128x128xf32, #tpu.memory_space<vmem>>, %arg2: memref<128x128xbf16, #tpu.memory_space<vmem>>, %arg3: memref<1x128xf32, #tpu.memory_space<vmem>>, %arg4: memref<128x128xbf16, #tpu.memory_space<vmem>>, %arg5: memref<1x128xf32, #tpu.memory_space<vmem>>, %arg6: memref<128x128xf32, #tpu.memory_space<vmem>>, %arg7: memref<1x128xf32, #tpu.memory_space<vmem>>) attributes {dimension_semantics = [#tpu.dimension_semantics<parallel>], iteration_bounds = array<i64: 1>, scalar_prefetch = 0 : i64, scratch_operands = 0 : i64, tpu.core_type = #tpu.core_type<tc>, window_params = [{transform_indices = @transform_0, window_bounds = array<i64: 128, 128>}, {pipeline_mode = #tpu.pipeline_mode<synchronous>, transform_indices = @transform_1, window_bounds = array<i64: 128, 128>}, {pipeline_mode = #tpu.pipeline_mode<synchronous>, transform_indices = @transform_2, window_bounds = array<i64: 1, 128>}, {pipeline_mode = #tpu.pipeline_mode<synchronous>, transform_indices = @transform_3, window_bounds = array<i64: 128, 128>}, {pipeline_mode = #tpu.pipeline_mode<synchronous>, transform_indices = @transform_4, window_bounds = array<i64: 1, 128>}, {transform_indices = @transform_5, window_bounds = array<i64: 128, 128>}, {transform_indices = @transform_6, window_bounds = array<i64: 1, 128>}]} {
    %c0 = arith.constant 0 : index
    %c0_0 = arith.constant 0 : index
    %0 = vector.load %arg1[%c0, %c0_0] : memref<128x128xf32, #tpu.memory_space<vmem>>, vector<128x128xf32>
    %1 = arith.truncf %0 : vector<128x128xf32> to vector<128x128xbf16>
    %c0_1 = arith.constant 0 : index
    %c0_2 = arith.constant 0 : index
    %2 = vector.load %arg2[%c0_1, %c0_2] : memref<128x128xbf16, #tpu.memory_space<vmem>>, vector<128x128xbf16>
    %cst = arith.constant dense<0.000000e+00> : vector<128x128xf32>
    %3 = tpu.matmul %1, %2, %cst {dimension_numbers = #tpu.dot_dimension_numbers<[1], [0], [0], [1], [0, 0, 1, 1], [], []>} : vector<128x128xbf16>, vector<128x128xbf16>, vector<128x128xf32> -> vector<128x128xf32>
    %c0_3 = arith.constant 0 : index
    %c0_4 = arith.constant 0 : index
    %4 = vector.load %arg3[%c0_3, %c0_4] : memref<1x128xf32, #tpu.memory_space<vmem>>, vector<1x128xf32>
    %5 = vector.broadcast %4 : vector<1x128xf32> to vector<128x128xf32>
    %6 = arith.addf %3, %5 : vector<128x128xf32>
    %c0_i32 = arith.constant 0 : i32
    %7 = arith.cmpi eq, %arg0, %c0_i32 : i32
    %8 = arith.extui %7 : i1 to i32
    %c0_i32_5 = arith.constant 0 : i32
    %9 = arith.cmpi ne, %8, %c0_i32_5 : i32
    scf.if %9 {
      %22 = tpu.iota {dimensions = array<i32: 0>} : vector<128x1xi32>
      %c128_i32 = arith.constant 128 : i32
      %23 = arith.muli %arg0, %c128_i32 : i32
      %24 = vector.broadcast %23 : i32 to vector<128x1xi32>
      %25 = arith.addi %22, %24 : vector<128x1xi32>
      %c16_i32 = arith.constant 16 : i32
      %26 = vector.broadcast %c16_i32 : i32 to vector<128x1xi32>
      %27 = arith.cmpi slt, %25, %26 : vector<128x1xi32>
      %28 = arith.subf %6, %0 : vector<128x128xf32>
      %cst_16 = arith.constant 0.000000e+00 : f32
      %29 = vector.shape_cast %27 : vector<128x1xi1> to vector<128x1xi1>
      %30 = vector.broadcast %29 : vector<128x1xi1> to vector<128x128xi1>
      %31 = vector.broadcast %cst_16 : f32 to vector<128x128xf32>
      %32 = arith.select %30, %28, %31 : vector<128x128xi1>, vector<128x128xf32>
      %33 = arith.mulf %32, %32 : vector<128x128xf32>
      %cst_17 = arith.constant dense<0.000000e+00> : vector<128xf32>
      %34 = vector.multi_reduction <add>, %33, %cst_17 [0] : vector<128x128xf32> to vector<128xf32>
      %35 = vector.shape_cast %34 : vector<128xf32> to vector<1x128xf32>
      %c0_18 = arith.constant 0 : index
      %c0_19 = arith.constant 0 : index
      %36 = vector.load %arg7[%c0_18, %c0_19] : memref<1x128xf32, #tpu.memory_space<vmem>>, vector<1x128xf32>
      tpu.vector_store %arg7[%c0_18, %c0_19], %35 {strides = array<i32>} : memref<1x128xf32, #tpu.memory_space<vmem>>, vector<1x128xf32>,
    } else {
    }
    %c0_i32_6 = arith.constant 0 : i32
    %10 = arith.cmpi ne, %arg0, %c0_i32_6 : i32
    %11 = arith.extui %10 : i1 to i32
    %c0_i32_7 = arith.constant 0 : i32
    %12 = arith.cmpi ne, %11, %c0_i32_7 : i32
    scf.if %12 {
      %22 = arith.subf %6, %0 : vector<128x128xf32>
      %23 = arith.mulf %22, %22 : vector<128x128xf32>
      %cst_16 = arith.constant dense<0.000000e+00> : vector<128xf32>
      %24 = vector.multi_reduction <add>, %23, %cst_16 [0] : vector<128x128xf32> to vector<128xf32>
      %25 = vector.shape_cast %24 : vector<128xf32> to vector<1x128xf32>
      %c0_17 = arith.constant 0 : index
      %c0_18 = arith.constant 0 : index
      %26 = vector.load %arg7[%c0_17, %c0_18] : memref<1x128xf32, #tpu.memory_space<vmem>>, vector<1x128xf32>
      tpu.vector_store %arg7[%c0_17, %c0_18], %25 {strides = array<i32>} : memref<1x128xf32, #tpu.memory_space<vmem>>, vector<1x128xf32>,
    } else {
    }
    %cst_8 = arith.constant 0.000000e+00 : f32
    %13 = vector.broadcast %cst_8 : f32 to vector<128x128xf32>
    %14 = arith.maximumf %6, %13 : vector<128x128xf32>
    %15 = arith.truncf %14 : vector<128x128xf32> to vector<128x128xbf16>
    %c0_9 = arith.constant 0 : index
    %c0_10 = arith.constant 0 : index
    %16 = vector.load %arg4[%c0_9, %c0_10] : memref<128x128xbf16, #tpu.memory_space<vmem>>, vector<128x128xbf16>
    %cst_11 = arith.constant dense<0.000000e+00> : vector<128x128xf32>
    %17 = tpu.matmul %15, %16, %cst_11 {dimension_numbers = #tpu.dot_dimension_numbers<[1], [0], [0], [1], [0, 0, 1, 1], [], []>} : vector<128x128xbf16>, vector<128x128xbf16>, vector<128x128xf32> -> vector<128x128xf32>
    %c0_12 = arith.constant 0 : index
    %c0_13 = arith.constant 0 : index
    %18 = vector.load %arg5[%c0_12, %c0_13] : memref<1x128xf32, #tpu.memory_space<vmem>>, vector<1x128xf32>
    %19 = vector.broadcast %18 : vector<1x128xf32> to vector<128x128xf32>
    %20 = arith.addf %17, %19 : vector<128x128xf32>
    %c0_14 = arith.constant 0 : index
    %c0_15 = arith.constant 0 : index
    %21 = vector.load %arg6[%c0_14, %c0_15] : memref<128x128xf32, #tpu.memory_space<vmem>>, vector<128x128xf32>
    tpu.vector_store %arg6[%c0_14, %c0_15], %20 {strides = array<i32>} : memref<128x128xf32, #tpu.memory_space<vmem>>, vector<128x128xf32>,
    return
  }
  func.func @transform_0(%arg0: i32) -> (i32, i32) {
    %c0_i32 = arith.constant 0 : i32
    %c0_i32_0 = arith.constant 0 : i32
    return %arg0, %c0_i32 : i32, i32
  }
  func.func @transform_1(%arg0: i32) -> (i32, i32) {
    %c0_i32 = arith.constant 0 : i32
    %c0_i32_0 = arith.constant 0 : i32
    %c0_i32_1 = arith.constant 0 : i32
    return %c0_i32, %c0_i32_0 : i32, i32
  }
  func.func @transform_2(%arg0: i32) -> (i32, i32) {
    %c0_i32 = arith.constant 0 : i32
    %c0_i32_0 = arith.constant 0 : i32
    %c0_i32_1 = arith.constant 0 : i32
    return %c0_i32, %c0_i32_0 : i32, i32
  }
  func.func @transform_3(%arg0: i32) -> (i32, i32) {
    %c0_i32 = arith.constant 0 : i32
    %c0_i32_0 = arith.constant 0 : i32
    %c0_i32_1 = arith.constant 0 : i32
    return %c0_i32, %c0_i32_0 : i32, i32
  }
  func.func @transform_4(%arg0: i32) -> (i32, i32) {
    %c0_i32 = arith.constant 0 : i32
    %c0_i32_0 = arith.constant 0 : i32
    %c0_i32_1 = arith.constant 0 : i32
    return %c0_i32, %c0_i32_0 : i32, i32
  }
  func.func @transform_5(%arg0: i32) -> (i32, i32) {
    %c0_i32 = arith.constant 0 : i32
    %c0_i32_0 = arith.constant 0 : i32
    return %arg0, %c0_i32 : i32, i32
  }
  func.func @transform_6(%arg0: i32) -> (i32, i32) {
    %c0_i32 = arith.constant 0 : i32
    %c0_i32_0 = arith.constant 0 : i32
    return %c0_i32, %arg0 : i32, i32
  }
}

module attributes {stable_mosaic.version = 11 : i64} {
  func.func @_layerdiff_rms_kernel(%arg0: i32, %arg1: memref<128x128xf32, #tpu.memory_space<vmem>>, %arg2: memref<128x128xbf16, #tpu.memory_space<vmem>>, %arg3: memref<1x128xf32, #tpu.memory_space<vmem>>, %arg4: memref<128x128xbf16, #tpu.memory_space<vmem>>, %arg5: memref<1x128xf32, #tpu.memory_space<vmem>>, %arg6: memref<128x128xf32, #tpu.memory_space<vmem>>, %arg7: memref<1x128xf32, #tpu.memory_space<vmem>>) attributes {dimension_semantics = [#tpu.dimension_semantics<parallel>], iteration_bounds = array<i64: 1>, scalar_prefetch = 0 : i64, scratch_operands = 0 : i64, tpu.core_type = #tpu.core_type<tc>, window_params = [{transform_indices = @transform_0, window_bounds = array<i64: 128, 128>}, {pipeline_mode = #tpu.pipeline_mode<synchronous>, transform_indices = @transform_1, window_bounds = array<i64: 128, 128>}, {pipeline_mode = #tpu.pipeline_mode<synchronous>, transform_indices = @transform_2, window_bounds = array<i64: 1, 128>}, {pipeline_mode = #tpu.pipeline_mode<synchronous>, transform_indices = @transform_3, window_bounds = array<i64: 128, 128>}, {pipeline_mode = #tpu.pipeline_mode<synchronous>, transform_indices = @transform_4, window_bounds = array<i64: 1, 128>}, {transform_indices = @transform_5, window_bounds = array<i64: 128, 128>}, {transform_indices = @transform_6, window_bounds = array<i64: 1, 128>}]} {
    %c0 = arith.constant 0 : index
    %c0_0 = arith.constant 0 : index
    %0 = vector.load %arg1[%c0, %c0_0] : memref<128x128xf32, #tpu.memory_space<vmem>>, vector<128x128xf32>
    %1 = arith.truncf %0 : vector<128x128xf32> to vector<128x128xbf16>
    %c0_1 = arith.constant 0 : index
    %c0_2 = arith.constant 0 : index
    %2 = vector.load %arg2[%c0_1, %c0_2] : memref<128x128xbf16, #tpu.memory_space<vmem>>, vector<128x128xbf16>
    %cst = arith.constant dense<0.000000e+00> : vector<128x128xf32>
    %3 = tpu.matmul %1, %2, %cst {dimension_numbers = #tpu.dot_dimension_numbers<[1], [0], [0], [1], [0, 0, 1, 1], [], []>} : vector<128x128xbf16>, vector<128x128xbf16>, vector<128x128xf32> -> vector<128x128xf32>
    %c0_3 = arith.constant 0 : index
    %c0_4 = arith.constant 0 : index
    %4 = vector.load %arg3[%c0_3, %c0_4] : memref<1x128xf32, #tpu.memory_space<vmem>>, vector<1x128xf32>
    %5 = vector.broadcast %4 : vector<1x128xf32> to vector<128x128xf32>
    %6 = arith.addf %3, %5 : vector<128x128xf32>
    %c0_i32 = arith.constant 0 : i32
    %7 = arith.cmpi eq, %arg0, %c0_i32 : i32
    %8 = arith.extui %7 : i1 to i32
    %c0_i32_5 = arith.constant 0 : i32
    %9 = arith.cmpi ne, %8, %c0_i32_5 : i32
    scf.if %9 {
      %22 = tpu.iota {dimensions = array<i32: 0>} : vector<128x1xi32>
      %c128_i32 = arith.constant 128 : i32
      %23 = arith.muli %arg0, %c128_i32 : i32
      %24 = vector.broadcast %23 : i32 to vector<128x1xi32>
      %25 = arith.addi %22, %24 : vector<128x1xi32>
      %c16_i32 = arith.constant 16 : i32
      %26 = vector.broadcast %c16_i32 : i32 to vector<128x1xi32>
      %27 = arith.cmpi slt, %25, %26 : vector<128x1xi32>
      %28 = arith.subf %6, %0 : vector<128x128xf32>
      %cst_16 = arith.constant 0.000000e+00 : f32
      %29 = vector.shape_cast %27 : vector<128x1xi1> to vector<128x1xi1>
      %30 = vector.broadcast %29 : vector<128x1xi1> to vector<128x128xi1>
      %31 = vector.broadcast %cst_16 : f32 to vector<128x128xf32>
      %32 = arith.select %30, %28, %31 : vector<128x128xi1>, vector<128x128xf32>
      %33 = arith.mulf %32, %32 : vector<128x128xf32>
      %cst_17 = arith.constant dense<0.000000e+00> : vector<128xf32>
      %34 = vector.multi_reduction <add>, %33, %cst_17 [0] : vector<128x128xf32> to vector<128xf32>
      %35 = vector.shape_cast %34 : vector<128xf32> to vector<1x128xf32>
      %c0_18 = arith.constant 0 : index
      %c0_19 = arith.constant 0 : index
      %36 = vector.load %arg7[%c0_18, %c0_19] : memref<1x128xf32, #tpu.memory_space<vmem>>, vector<1x128xf32>
      tpu.vector_store %arg7[%c0_18, %c0_19], %35 {strides = array<i32>} : memref<1x128xf32, #tpu.memory_space<vmem>>, vector<1x128xf32>,
    } else {
    }
    %c0_i32_6 = arith.constant 0 : i32
    %10 = arith.cmpi ne, %arg0, %c0_i32_6 : i32
    %11 = arith.extui %10 : i1 to i32
    %c0_i32_7 = arith.constant 0 : i32
    %12 = arith.cmpi ne, %11, %c0_i32_7 : i32
    scf.if %12 {
      %22 = arith.subf %6, %0 : vector<128x128xf32>
      %23 = arith.mulf %22, %22 : vector<128x128xf32>
      %cst_16 = arith.constant dense<0.000000e+00> : vector<128xf32>
      %24 = vector.multi_reduction <add>, %23, %cst_16 [0] : vector<128x128xf32> to vector<128xf32>
      %25 = vector.shape_cast %24 : vector<128xf32> to vector<1x128xf32>
      %c0_17 = arith.constant 0 : index
      %c0_18 = arith.constant 0 : index
      %26 = vector.load %arg7[%c0_17, %c0_18] : memref<1x128xf32, #tpu.memory_space<vmem>>, vector<1x128xf32>
      tpu.vector_store %arg7[%c0_17, %c0_18], %25 {strides = array<i32>} : memref<1x128xf32, #tpu.memory_space<vmem>>, vector<1x128xf32>,
    } else {
    }
    %cst_8 = arith.constant 0.000000e+00 : f32
    %13 = vector.broadcast %cst_8 : f32 to vector<128x128xf32>
    %14 = arith.maximumf %6, %13 : vector<128x128xf32>
    %15 = arith.truncf %14 : vector<128x128xf32> to vector<128x128xbf16>
    %c0_9 = arith.constant 0 : index
    %c0_10 = arith.constant 0 : index
    %16 = vector.load %arg4[%c0_9, %c0_10] : memref<128x128xbf16, #tpu.memory_space<vmem>>, vector<128x128xbf16>
    %cst_11 = arith.constant dense<0.000000e+00> : vector<128x128xf32>
    %17 = tpu.matmul %15, %16, %cst_11 {dimension_numbers = #tpu.dot_dimension_numbers<[1], [0], [0], [1], [0, 0, 1, 1], [], []>} : vector<128x128xbf16>, vector<128x128xbf16>, vector<128x128xf32> -> vector<128x128xf32>
    %c0_12 = arith.constant 0 : index
    %c0_13 = arith.constant 0 : index
    %18 = vector.load %arg5[%c0_12, %c0_13] : memref<1x128xf32, #tpu.memory_space<vmem>>, vector<1x128xf32>
    %19 = vector.broadcast %18 : vector<1x128xf32> to vector<128x128xf32>
    %20 = arith.addf %17, %19 : vector<128x128xf32>
    %c0_14 = arith.constant 0 : index
    %c0_15 = arith.constant 0 : index
    %21 = vector.load %arg6[%c0_14, %c0_15] : memref<128x128xf32, #tpu.memory_space<vmem>>, vector<128x128xf32>
    tpu.vector_store %arg6[%c0_14, %c0_15], %20 {strides = array<i32>} : memref<128x128xf32, #tpu.memory_space<vmem>>, vector<128x128xf32>,
    return
  }
  func.func @transform_0(%arg0: i32) -> (i32, i32) {
    %c0_i32 = arith.constant 0 : i32
    %c0_i32_0 = arith.constant 0 : i32
    return %arg0, %c0_i32 : i32, i32
  }
  func.func @transform_1(%arg0: i32) -> (i32, i32) {
    %c0_i32 = arith.constant 0 : i32
    %c0_i32_0 = arith.constant 0 : i32
    %c0_i32_1 = arith.constant 0 : i32
    return %c0_i32, %c0_i32_0 : i32, i32
  }
  func.func @transform_2(%arg0: i32) -> (i32, i32) {
    %c0_i32 = arith.constant 0 : i32
    %c0_i32_0 = arith.constant 0 : i32
    %c0_i32_1 = arith.constant 0 : i32
    return %c0_i32, %c0_i32_0 : i32, i32
  }
  func.func @transform_3(%arg0: i32) -> (i32, i32) {
    %c0_i32 = arith.constant 0 : i32
    %c0_i32_0 = arith.constant 0 : i32
    %c0_i32_1 = arith.constant 0 : i32
    return %c0_i32, %c0_i32_0 : i32, i32
  }
  func.func @transform_4(%arg0: i32) -> (i32, i32) {
    %c0_i32 = arith.constant 0 : i32
    %c0_i32_0 = arith.constant 0 : i32
    %c0_i32_1 = arith.constant 0 : i32
    return %c0_i32, %c0_i32_0 : i32, i32
  }
  func.func @transform_5(%arg0: i32) -> (i32, i32) {
    %c0_i32 = arith.constant 0 : i32
    %c0_i32_0 = arith.constant 0 : i32
    return %arg0, %c0_i32 : i32, i32
  }
  func.func @transform_6(%arg0: i32) -> (i32, i32) {
    %c0_i32 = arith.constant 0 : i32
    %c0_i32_0 = arith.constant 0 : i32
    return %c0_i32, %arg0 : i32, i32
  }
}

</mosaic_0001>

<bundles_post_ra>
// kernel: tpu_custom_call.1
= control target key start
LH: loop header
LB: loop body
LE: loop exit
PB: predicated region body
PF: predicated region fallthrough
CT: control target
= control target key end

     0   :  { %12 = vsyncpa [#allocation3], 0  ;;  %s952_s0 = inlined_call_operand.hbm [shape: f32[128,128], index: 0, kind: input, shape index: {}]   ;;  %s953_s1 = inlined_call_operand.hbm [shape: bf16[128,128], index: 1, kind: input, shape index: {}]   ;;  %s954_s2 = inlined_call_operand.vmem [shape: f32[1,128], index: 2, kind: input, shape index: {}]   ;;  %s955_s3 = inlined_call_operand.hbm [shape: bf16[128,128], index: 3, kind: input, shape index: {}]   ;;  %s956_s4 = inlined_call_operand.vmem [shape: f32[1,128], index: 4, kind: input, shape index: {}]   ;;  %s957_s5 = inlined_call_operand.hbm [shape: f32[128,128], index: 5, kind: output, shape index: {0}]   ;;  %s958_s6 = inlined_call_operand.hbm [shape: f32[1,128], index: 6, kind: output, shape index: {1}]  }
   0x1   :  { %13 = vsyncpa [#allocation6], 0 }
   0x2   :  { %14 = vsyncpa [#allocation4], 0  ;;  %s33_s23 = sshll.u32 %s953_s1, 4  ;;  %s34_s23 = int_to_ptr.hbm [resolvable:$true] %s33_s23 }
   0x3   :  { %15 = vsyncpa [#allocation10], 0  ;;  %s855_s24 = smov [#allocation5]   ;;  %s20_s28 = sshll.u32 %s952_s0, 4  ;;  %s21_s28 = int_to_ptr.hbm [resolvable:$true] %s20_s28 }
   0x4   :  { %s35_s25 = sshll.u32 %s855_s24, 4  ;;  %s856_s29 = smov 64   ;;  %s36_s25 = int_to_ptr.vmem [resolvable:$true] %s35_s25 }
   0x5   :  { %s857_s30 = smov 4   ;;  %s858_s7 = smov [#allocation2]  }
   0x6   :  { %41 = dma.hbm_to_vmem [thread:$0]  %s34_s23, 1024, %s36_s25, [#allocation6], %s856_s29, %s856_s29, %s857_s30  }
   0x7   :  { %s22_s8 = sshll.u32 %s858_s7, 4  ;;  %s859_s9 = smov 128   ;;  %s23_s8 = int_to_ptr.vmem [resolvable:$true] %s22_s8 }
   0x8   :  { %s860_s10 = smov 8   ;;  %s48_s12 = sshll.u32 %s955_s3, 4  ;;  %s49_s12 = int_to_ptr.hbm [resolvable:$true] %s48_s12 }
   0x9   :  { %28 = dma.hbm_to_vmem [thread:$0]  %s21_s28, 2048, %s23_s8, [#allocation3], %s859_s9, %s859_s9, %s860_s10  }
   0xa   :  { %s861_s13 = smov [#allocation7]  }
   0xb   :  { %s50_s0 = sshll.u32 %s861_s13, 4  ;;  %s51_s0 = int_to_ptr.vmem [resolvable:$true] %s50_s0 }
   0xc   :  { %56 = dma.hbm_to_vmem [thread:$0]  %s49_s12, 1024, %s51_s0, [#allocation6], %s856_s29, %s856_s29, %s857_s30  }
   0xd   :  { %847 = dma.done.wait [#allocation3], 2048  }
   0xe   :  { %848 = vsyncadd [#allocation3], 4294965248 }
   0xf   :  { %849 = dma.done.wait [#allocation6], 2048  }
  0x10   :  { %850 = vsyncadd [#allocation6], 4294965248  ;;  %v691_v0 = vld [vmem:[#allocation5 + $0x38] sm:$0xff]  ;;  %v690_v1 = vld [vmem:[#allocation5 + $0x30] sm:$0xff]  ;;  %s604_s18 = sshll.u32 %s958_s6, 4  ;;  %s590_s23 = sshll.u32 %s957_s5, 4  ;;  %s605_s18 = int_to_ptr.hbm [resolvable:$true] %s604_s18  ;;  %s591_s23 = int_to_ptr.hbm [resolvable:$true] %s590_s23 }
  0x11   :  { %163 = vmatpush.bf16.msra.mxu0 %v691_v0  ;;  %700 = vmatpush.bf16.msra.mxu2 %v691_v0  ;;  %v689_v2 = vld [vmem:[#allocation5 + $0x28] sm:$0xff]  ;;  %v688_v3 = vld [vmem:[#allocation5 + $0x20] sm:$0xff]  ;;  %v687_v4 = vld [vmem:[#allocation5 + $0x18] sm:$0xff] }
  0x12   :  { %v686_v5 = vld [vmem:[#allocation5 + $0x10] sm:$0xff]  ;;  %v685_v6 = vld [vmem:[#allocation5 + $0x8] sm:$0xff]  ;;  %v684_v7 = vld [vmem:[#allocation5] sm:$0xff] }
  0x13   :  { %v911_v8 = vld [vmem:[#allocation2] sm:$0xff]  ;;  %v913_v9 = vld [vmem:[#allocation2 + $0x8] sm:$0xff]  ;;  %v73_v14 = vld [vmem:[#allocation2 + $0x10] sm:$0xff] }
  0x14   :  { %v79_v10 = vld [vmem:[#allocation2 + $0x40] sm:$0xff]  ;;  %v80_v11 = vld [vmem:[#allocation2 + $0x48] sm:$0xff]  ;;  %v87_v12 = vpack.c.bf16 %v913_v9, %v911_v8  ;;  %v74_v15 = vld [vmem:[#allocation2 + $0x18] sm:$0xff] }
  0x15   :  { %164 = vmatpush.bf16.msra.mxu0 %v690_v1  ;;  %701 = vmatpush.bf16.msra.mxu2 %v690_v1  ;;  %v91_v13 = vpack.c.bf16 %v80_v11, %v79_v10  ;;  %v81_v16 = vld [vmem:[#allocation2 + $0x50] sm:$0xff]  ;;  %v82_v17 = vld [vmem:[#allocation2 + $0x58] sm:$0xff]  ;;  %v88_v18 = vpack.c.bf16 %v74_v15, %v73_v14  ;;  %v697_v22 = vld [vmem:[#allocation7 + $0x28] sm:$0xff] }
  0x16   :  { %v92_v19 = vpack.c.bf16 %v82_v17, %v81_v16  ;;  %v699_v20 = vld [vmem:[#allocation7 + $0x38] sm:$0xff]  ;;  %v698_v21 = vld [vmem:[#allocation7 + $0x30] sm:$0xff]  ;;  %v75_v23 = vld [vmem:[#allocation2 + $0x20] sm:$0xff] }
  0x17   :  { %519 = vmatpush.bf16.msra.mxu1 %v699_v20  ;;  %708 = vmatpush.bf16.msra.mxu3 %v699_v20  ;;  %v76_v24 = vld [vmem:[#allocation2 + $0x28] sm:$0xff]  ;;  %v83_v25 = vld [vmem:[#allocation2 + $0x60] sm:$0xff]  ;;  %v77_v30 = vld [vmem:[#allocation2 + $0x30] sm:$0xff] }
  0x18   :  { %v84_v26 = vld [vmem:[#allocation2 + $0x68] sm:$0xff]  ;;  %v696_v27 = vld [vmem:[#allocation7 + $0x20] sm:$0xff]  ;;  %v89_v28 = vpack.c.bf16 %v76_v24, %v75_v23  ;;  %v78_v31 = vld [vmem:[#allocation2 + $0x38] sm:$0xff] }
  0x19   :  { %165 = vmatpush.bf16.msra.mxu0 %v689_v2  ;;  %702 = vmatpush.bf16.msra.mxu2 %v689_v2  ;;  %v93_v29 = vpack.c.bf16 %v84_v26, %v83_v25  ;;  %v85_v32 = vld [vmem:[#allocation2 + $0x70] sm:$0xff]  ;;  %v86_v33 = vld [vmem:[#allocation2 + $0x78] sm:$0xff]  ;;  %v90_v34 = vpack.c.bf16 %v78_v31, %v77_v30  ;;  %v693_v38 = vld [vmem:[#allocation7 + $0x8] sm:$0xff] }
  0x1a   :  { %v94_v35 = vpack.c.bf16 %v86_v33, %v85_v32  ;;  %v695_v36 = vld [vmem:[#allocation7 + $0x18] sm:$0xff]  ;;  %v694_v37 = vld [vmem:[#allocation7 + $0x10] sm:$0xff]  ;;  %v692_v39 = vld [vmem:[#allocation7] sm:$0xff] }
  0x1b   :  { %520 = vmatpush.bf16.msra.mxu1 %v698_v21  ;;  %709 = vmatpush.bf16.msra.mxu3 %v698_v21  ;;  %v920_v41 = vld [vmem:[%s954_s2] ss:$0 sm:$0xff]  ;;  %s862_s2 = smov [#allocation9]  }
  0x1c   :  { %s602_s15 = sshll.u32 %s862_s2, 4  ;;  %s603_s15 = int_to_ptr.vmem [resolvable:$true] %s602_s15 }
  0x1d   :  { %166 = vmatpush.bf16.msra.mxu0 %v688_v3  ;;  %703 = vmatpush.bf16.msra.mxu2 %v688_v3 }
  0x1f   :  { %521 = vmatpush.bf16.msra.mxu1 %v697_v22  ;;  %710 = vmatpush.bf16.msra.mxu3 %v697_v22 }
  0x21   :  { %167 = vmatpush.bf16.msra.mxu0 %v687_v4  ;;  %704 = vmatpush.bf16.msra.mxu2 %v687_v4 }
  0x23   :  { %522 = vmatpush.bf16.msra.mxu1 %v696_v27  ;;  %711 = vmatpush.bf16.msra.mxu3 %v696_v27 }
  0x25   :  { %168 = vmatpush.bf16.msra.mxu0 %v686_v5  ;;  %705 = vmatpush.bf16.msra.mxu2 %v686_v5 }
  0x27   :  { %523 = vmatpush.bf16.msra.mxu1 %v695_v36  ;;  %712 = vmatpush.bf16.msra.mxu3 %v695_v36 }
  0x29   :  { %169 = vmatpush.bf16.msra.mxu0 %v685_v6  ;;  %706 = vmatpush.bf16.msra.mxu2 %v685_v6 }
  0x2b   :  { %524 = vmatpush.bf16.msra.mxu1 %v694_v37  ;;  %713 = vmatpush.bf16.msra.mxu3 %v694_v37 }
  0x2d   :  { %170 = vmatpush.bf16.msra.mxu0 %v684_v7  ;;  %707 = vmatpush.bf16.msra.mxu2 %v684_v7 }
  0x2f   :  { %525 = vmatpush.bf16.msra.mxu1 %v693_v38  ;;  %714 = vmatpush.bf16.msra.mxu3 %v693_v38 }
  0x30   :  { %171 = vmatmul.bf16.vlgmr.msra.gmra.mxu0 %v87_v12  ;;  %191 = vmatmul.bf16.vlgmr.msra.gmra.mxu2 %v91_v13 }
  0x33   :  { %526 = vmatpush.bf16.msra.mxu1 %v692_v39  ;;  %715 = vmatpush.bf16.msra.mxu3 %v692_v39 }
  0x40   :  { %176 = vmatmul.bf16.gmra.mxu0 %v88_v18  ;;  %196 = vmatmul.bf16.gmra.mxu2 %v92_v19 }
  0x50   :  { %181 = vmatmul.bf16.gmra.mxu0 %v89_v28  ;;  %201 = vmatmul.bf16.gmra.mxu2 %v93_v29 }
  0x60   :  { %186 = vmatmul.bf16.gmra.mxu0 %v90_v34  ;;  %206 = vmatmul.bf16.gmra.mxu2 %v94_v35 }
  0xad   :  { %v172_v40 = vpop.f32.mrf.mxu0 }
  0xae   :  { %v173_v42 = vadd.f32 %v920_v41, %v172_v40 }
  0xb0   :  { %v267_v44 = vsub.f32 %v173_v42, %v911_v8  ;;  %v427_v46 = vmax.f32 %v173_v42, 0.0 }
  0xb2   :  { %v331_v48 = vmul.f32 %v267_v44, %v267_v44 }
  0xb3   :  { %v192_v43 = vpop.f32.mrf.mxu2 }
  0xb4   :  { %v193_v51 = vadd.f32 %v920_v41, %v192_v43 }
  0xb5   :  { %v174_v45 = vpop.f32.mrf.mxu0 }
  0xb6   :  { %v175_v47 = vadd.f32 %v920_v41, %v174_v45  ;;  %v435_v58 = vmax.f32 %v193_v51, 0.0  ;;  %v726_v45 = vld [vmem:[%s956_s4] ss:$0 sm:$0xff]  ;;  %s863_s4 = smov [#allocation8]  }
  0xb7   :  { %s588_s6 = sshll.u32 %s863_s4, 4  ;;  %s589_s6 = int_to_ptr.vmem [resolvable:$true] %s588_s6 }
  0xb8   :  { %v268_v49 = vsub.f32 %v175_v47, %v913_v9  ;;  %v428_v50 = vmax.f32 %v175_v47, 0.0 }
  0xba   :  { %v332_v52 = vmul.f32 %v268_v49, %v268_v49  ;;  %v443_v53 = vpack.c.bf16 %v428_v50, %v427_v46 }
  0xbb   :  { %v194_v54 = vpop.f32.mrf.mxu2 }
  0xbc   :  { %v347_v55 = vadd.f32 %v332_v52, %v331_v48  ;;  %v195_v56 = vadd.f32 %v920_v41, %v194_v54  ;;  %527 = vmatmul.bf16.vlgmr.msra.gmra.mxu1 %v443_v53 }
  0xbd   :  { %v177_v57 = vpop.f32.mrf.mxu0 }
  0xbe   :  { %v362_v59 = vrot.slane %v347_v55, 4  ;;  %v436_v60 = vmax.f32 %v195_v56, 0.0  ;;  %v178_v0 = vadd.f32 %v920_v41, %v177_v57 }
  0xc0   :  { %v363_v61 = vadd.f32 %v362_v59, %v347_v55  ;;  %v447_v62 = vpack.c.bf16 %v436_v60, %v435_v58  ;;  %v429_v4 = vmax.f32 %v178_v0, 0.0 }
  0xc2   :  { %v364_v63 = vrot.slane %v363_v61, 2  ;;  %547 = vmatmul.bf16.vlgmr.msra.gmra.mxu3 %v447_v62 }
  0xc3   :  { %v197_v1 = vpop.f32.mrf.mxu2 }
  0xc4   :  { %v365_v2 = vadd.f32 %v364_v63, %v363_v61  ;;  %v198_v9 = vadd.f32 %v920_v41, %v197_v1 }
  0xc5   :  { %v179_v3 = vpop.f32.mrf.mxu0 }
  0xc6   :  { %v180_v5 = vadd.f32 %v920_v41, %v179_v3  ;;  %v366_v6 = vrot.slane %v365_v2, 1  ;;  %v437_v14 = vmax.f32 %v198_v9, 0.0 }
  0xc8   :  { %v430_v7 = vmax.f32 %v180_v5, 0.0  ;;  %v367_v8 = vadd.f32 %v366_v6, %v365_v2 }
  0xca   :  { %v444_v10 = vpack.c.bf16 %v430_v7, %v429_v4  ;;  %368 = vst [vmem:[#allocation9] sm:$0x1] %v367_v8 }
  0xcb   :  { %v199_v11 = vpop.f32.mrf.mxu2  ;;  %607 = dma.vmem_to_hbm [thread:$0]  %s603_s15, 16, %s605_s18, [#allocation10]  }
  0xcc   :  { %v200_v12 = vadd.f32 %v920_v41, %v199_v11  ;;  %532 = vmatmul.bf16.gmra.mxu1 %v444_v10 }
  0xcd   :  { %v182_v13 = vpop.f32.mrf.mxu0 }
  0xce   :  { %v438_v15 = vmax.f32 %v200_v12, 0.0  ;;  %v183_v17 = vadd.f32 %v920_v41, %v182_v13 }
  0xd0   :  { %v448_v16 = vpack.c.bf16 %v438_v15, %v437_v14  ;;  %v431_v20 = vmax.f32 %v183_v17, 0.0 }
  0xd2   :  { %552 = vmatmul.bf16.gmra.mxu3 %v448_v16 }
  0xd3   :  { %v202_v18 = vpop.f32.mrf.mxu2 }
  0xd4   :  { %v203_v23 = vadd.f32 %v920_v41, %v202_v18 }
  0xd5   :  { %v184_v19 = vpop.f32.mrf.mxu0 }
  0xd6   :  { %v185_v21 = vadd.f32 %v920_v41, %v184_v19  ;;  %v439_v28 = vmax.f32 %v203_v23, 0.0 }
  0xd8   :  { %v432_v22 = vmax.f32 %v185_v21, 0.0 }
  0xda   :  { %v445_v24 = vpack.c.bf16 %v432_v22, %v431_v20 }
  0xdb   :  { %v204_v25 = vpop.f32.mrf.mxu2 }
  0xdc   :  { %v205_v26 = vadd.f32 %v920_v41, %v204_v25  ;;  %537 = vmatmul.bf16.gmra.mxu1 %v445_v24 }
  0xdd   :  { %v187_v27 = vpop.f32.mrf.mxu0 }
  0xde   :  { %v440_v29 = vmax.f32 %v205_v26, 0.0  ;;  %v188_v31 = vadd.f32 %v920_v41, %v187_v27 }
  0xe0   :  { %v449_v30 = vpack.c.bf16 %v440_v29, %v439_v28  ;;  %v433_v34 = vmax.f32 %v188_v31, 0.0 }
  0xe2   :  { %557 = vmatmul.bf16.gmra.mxu3 %v449_v30 }
  0xe3   :  { %v207_v32 = vpop.f32.mrf.mxu2 }
  0xe4   :  { %v208_v37 = vadd.f32 %v920_v41, %v207_v32 }
  0xe5   :  { %v189_v33 = vpop.f32.mrf.mxu0 }
  0xe6   :  { %v190_v35 = vadd.f32 %v920_v41, %v189_v33  ;;  %v441_v42 = vmax.f32 %v208_v37, 0.0 }
  0xe8   :  { %v434_v36 = vmax.f32 %v190_v35, 0.0 }
  0xea   :  { %v446_v38 = vpack.c.bf16 %v434_v36, %v433_v34 }
  0xeb   :  { %v209_v39 = vpop.f32.mrf.mxu2 }
  0xec   :  { %v210_v40 = vadd.f32 %v920_v41, %v209_v39  ;;  %542 = vmatmul.bf16.gmra.mxu1 %v446_v38 }
  0xee   :  { %v442_v43 = vmax.f32 %v210_v40, 0.0 }
  0xf0   :  { %v450_v44 = vpack.c.bf16 %v442_v43, %v441_v42 }
  0xf2   :  { %562 = vmatmul.bf16.gmra.mxu3 %v450_v44 }
 0x139   :  { %v528_v46 = vpop.f32.mrf.mxu1 }
 0x13a   :  { %v529_v41 = vadd.f32 %v726_v45, %v528_v46 }
 0x13c   :  { %568 = vst [vmem:[#allocation8] sm:$0xff] %v529_v41 }
 0x141   :  { %v530_v47 = vpop.f32.mrf.mxu1 }
 0x142   :  { %v531_v48 = vadd.f32 %v726_v45, %v530_v47 }
 0x144   :  { %569 = vst [vmem:[#allocation8 + $0x8] sm:$0xff] %v531_v48 }
 0x145   :  { %v548_v49 = vpop.f32.mrf.mxu3 }
 0x146   :  { %v549_v50 = vadd.f32 %v726_v45, %v548_v49 }
 0x148   :  { %576 = vst [vmem:[#allocation8 + $0x40] sm:$0xff] %v549_v50 }
 0x149   :  { %v533_v51 = vpop.f32.mrf.mxu1 }
 0x14a   :  { %v534_v52 = vadd.f32 %v726_v45, %v533_v51 }
 0x14c   :  { %570 = vst [vmem:[#allocation8 + $0x10] sm:$0xff] %v534_v52 }
 0x14d   :  { %v550_v53 = vpop.f32.mrf.mxu3 }
 0x14e   :  { %v551_v54 = vadd.f32 %v726_v45, %v550_v53 }
 0x150   :  { %577 = vst [vmem:[#allocation8 + $0x48] sm:$0xff] %v551_v54 }
 0x151   :  { %v535_v55 = vpop.f32.mrf.mxu1 }
 0x152   :  { %v536_v56 = vadd.f32 %v726_v45, %v535_v55 }
 0x154   :  { %571 = vst [vmem:[#allocation8 + $0x18] sm:$0xff] %v536_v56 }
 0x155   :  { %v553_v57 = vpop.f32.mrf.mxu3 }
 0x156   :  { %v554_v58 = vadd.f32 %v726_v45, %v553_v57 }
 0x158   :  { %578 = vst [vmem:[#allocation8 + $0x50] sm:$0xff] %v554_v58 }
 0x159   :  { %v538_v59 = vpop.f32.mrf.mxu1 }
 0x15a   :  { %v539_v60 = vadd.f32 %v726_v45, %v538_v59 }
 0x15c   :  { %572 = vst [vmem:[#allocation8 + $0x20] sm:$0xff] %v539_v60 }
 0x15d   :  { %v555_v61 = vpop.f32.mrf.mxu3 }
 0x15e   :  { %v556_v62 = vadd.f32 %v726_v45, %v555_v61 }
 0x160   :  { %579 = vst [vmem:[#allocation8 + $0x58] sm:$0xff] %v556_v62 }
 0x161   :  { %v540_v63 = vpop.f32.mrf.mxu1 }
 0x162   :  { %v541_v0 = vadd.f32 %v726_v45, %v540_v63 }
 0x164   :  { %573 = vst [vmem:[#allocation8 + $0x28] sm:$0xff] %v541_v0 }
 0x165   :  { %v558_v1 = vpop.f32.mrf.mxu3 }
 0x166   :  { %v559_v2 = vadd.f32 %v726_v45, %v558_v1 }
 0x168   :  { %580 = vst [vmem:[#allocation8 + $0x60] sm:$0xff] %v559_v2 }
 0x169   :  { %v543_v3 = vpop.f32.mrf.mxu1 }
 0x16a   :  { %v544_v4 = vadd.f32 %v726_v45, %v543_v3 }
 0x16c   :  { %574 = vst [vmem:[#allocation8 + $0x30] sm:$0xff] %v544_v4 }
 0x16d   :  { %v560_v5 = vpop.f32.mrf.mxu3 }
 0x16e   :  { %v561_v6 = vadd.f32 %v726_v45, %v560_v5 }
 0x170   :  { %581 = vst [vmem:[#allocation8 + $0x68] sm:$0xff] %v561_v6 }
 0x171   :  { %v545_v7 = vpop.f32.mrf.mxu1 }
 0x172   :  { %v546_v8 = vadd.f32 %v726_v45, %v545_v7 }
 0x174   :  { %575 = vst [vmem:[#allocation8 + $0x38] sm:$0xff] %v546_v8 }
 0x175   :  { %v563_v9 = vpop.f32.mrf.mxu3 }
 0x176   :  { %v564_v10 = vadd.f32 %v726_v45, %v563_v9 }
 0x178   :  { %582 = vst [vmem:[#allocation8 + $0x70] sm:$0xff] %v564_v10 }
 0x17d   :  { %v565_v11 = vpop.f32.mrf.mxu3 }
 0x17e   :  { %v566_v12 = vadd.f32 %v726_v45, %v565_v11 }
 0x180   :  { %583 = vst [vmem:[#allocation8 + $0x78] sm:$0xff] %v566_v12 }
 0x181   :  { %596 = dma.vmem_to_hbm [thread:$0]  %s589_s6, 2048, %s591_s23, [#allocation4], %s859_s9, %s859_s9, %s860_s10  }
 0x182   :  { %851 = dma.done.wait [#allocation4], 2048  }
 0x183   :  { %852 = vsyncadd [#allocation4], 4294965248 }
 0x184   :  { %853 = dma.done.wait [#allocation10], 16  }
 0x185   :  { %854 = vsyncadd [#allocation10], 4294967280 }
 0x186   :  { %616 = vsyncpa [#allocation3], 1 }
 0x187   :  { %617 = vsyncpa [#allocation6], 1 }
 0x188   :  { %618 = vsyncpa [#allocation4], 1 }
 0x189   :  { %619 = vsyncpa [#allocation10], 1 }

// kernel: tpu_custom_call.1
= control target key start
LH: loop header
LB: loop body
LE: loop exit
PB: predicated region body
PF: predicated region fallthrough
CT: control target
= control target key end

     0   :  { %12 = vsyncpa [#allocation3], 0  ;;  %s952_s0 = inlined_call_operand.hbm [shape: f32[128,128], index: 0, kind: input, shape index: {}]   ;;  %s953_s1 = inlined_call_operand.hbm [shape: bf16[128,128], index: 1, kind: input, shape index: {}]   ;;  %s954_s2 = inlined_call_operand.vmem [shape: f32[1,128], index: 2, kind: input, shape index: {}]   ;;  %s955_s3 = inlined_call_operand.hbm [shape: bf16[128,128], index: 3, kind: input, shape index: {}]   ;;  %s956_s4 = inlined_call_operand.vmem [shape: f32[1,128], index: 4, kind: input, shape index: {}]   ;;  %s957_s5 = inlined_call_operand.hbm [shape: f32[128,128], index: 5, kind: output, shape index: {0}]   ;;  %s958_s6 = inlined_call_operand.hbm [shape: f32[1,128], index: 6, kind: output, shape index: {1}]  }
   0x1   :  { %13 = vsyncpa [#allocation6], 0 }
   0x2   :  { %14 = vsyncpa [#allocation4], 0  ;;  %s33_s23 = sshll.u32 %s953_s1, 4  ;;  %s34_s23 = int_to_ptr.hbm [resolvable:$true] %s33_s23 }
   0x3   :  { %15 = vsyncpa [#allocation10], 0  ;;  %s855_s24 = smov [#allocation5]   ;;  %s20_s28 = sshll.u32 %s952_s0, 4  ;;  %s21_s28 = int_to_ptr.hbm [resolvable:$true] %s20_s28 }
   0x4   :  { %s35_s25 = sshll.u32 %s855_s24, 4  ;;  %s856_s29 = smov 64   ;;  %s36_s25 = int_to_ptr.vmem [resolvable:$true] %s35_s25 }
   0x5   :  { %s857_s30 = smov 4   ;;  %s858_s7 = smov [#allocation2]  }
   0x6   :  { %41 = dma.hbm_to_vmem [thread:$0]  %s34_s23, 1024, %s36_s25, [#allocation6], %s856_s29, %s856_s29, %s857_s30  }
   0x7   :  { %s22_s8 = sshll.u32 %s858_s7, 4  ;;  %s859_s9 = smov 128   ;;  %s23_s8 = int_to_ptr.vmem [resolvable:$true] %s22_s8 }
   0x8   :  { %s860_s10 = smov 8   ;;  %s48_s12 = sshll.u32 %s955_s3, 4  ;;  %s49_s12 = int_to_ptr.hbm [resolvable:$true] %s48_s12 }
   0x9   :  { %28 = dma.hbm_to_vmem [thread:$0]  %s21_s28, 2048, %s23_s8, [#allocation3], %s859_s9, %s859_s9, %s860_s10  }
   0xa   :  { %s861_s13 = smov [#allocation7]  }
   0xb   :  { %s50_s0 = sshll.u32 %s861_s13, 4  ;;  %s51_s0 = int_to_ptr.vmem [resolvable:$true] %s50_s0 }
   0xc   :  { %56 = dma.hbm_to_vmem [thread:$0]  %s49_s12, 1024, %s51_s0, [#allocation6], %s856_s29, %s856_s29, %s857_s30  }
   0xd   :  { %847 = dma.done.wait [#allocation3], 2048  }
   0xe   :  { %848 = vsyncadd [#allocation3], 4294965248 }
   0xf   :  { %849 = dma.done.wait [#allocation6], 2048  }
  0x10   :  { %850 = vsyncadd [#allocation6], 4294965248  ;;  %v691_v0 = vld [vmem:[#allocation5 + $0x38] sm:$0xff]  ;;  %v690_v1 = vld [vmem:[#allocation5 + $0x30] sm:$0xff]  ;;  %s604_s18 = sshll.u32 %s958_s6, 4  ;;  %s590_s23 = sshll.u32 %s957_s5, 4  ;;  %s605_s18 = int_to_ptr.hbm [resolvable:$true] %s604_s18  ;;  %s591_s23 = int_to_ptr.hbm [resolvable:$true] %s590_s23 }
  0x11   :  { %163 = vmatpush.bf16.msra.mxu0 %v691_v0  ;;  %700 = vmatpush.bf16.msra.mxu2 %v691_v0  ;;  %v689_v2 = vld [vmem:[#allocation5 + $0x28] sm:$0xff]  ;;  %v688_v3 = vld [vmem:[#allocation5 + $0x20] sm:$0xff]  ;;  %v687_v4 = vld [vmem:[#allocation5 + $0x18] sm:$0xff] }
  0x12   :  { %v686_v5 = vld [vmem:[#allocation5 + $0x10] sm:$0xff]  ;;  %v685_v6 = vld [vmem:[#allocation5 + $0x8] sm:$0xff]  ;;  %v684_v7 = vld [vmem:[#allocation5] sm:$0xff] }
  0x13   :  { %v911_v8 = vld [vmem:[#allocation2] sm:$0xff]  ;;  %v913_v9 = vld [vmem:[#allocation2 + $0x8] sm:$0xff]  ;;  %v73_v14 = vld [vmem:[#allocation2 + $0x10] sm:$0xff] }
  0x14   :  { %v79_v10 = vld [vmem:[#allocation2 + $0x40] sm:$0xff]  ;;  %v80_v11 = vld [vmem:[#allocation2 + $0x48] sm:$0xff]  ;;  %v87_v12 = vpack.c.bf16 %v913_v9, %v911_v8  ;;  %v74_v15 = vld [vmem:[#allocation2 + $0x18] sm:$0xff] }
  0x15   :  { %164 = vmatpush.bf16.msra.mxu0 %v690_v1  ;;  %701 = vmatpush.bf16.msra.mxu2 %v690_v1  ;;  %v91_v13 = vpack.c.bf16 %v80_v11, %v79_v10  ;;  %v81_v16 = vld [vmem:[#allocation2 + $0x50] sm:$0xff]  ;;  %v82_v17 = vld [vmem:[#allocation2 + $0x58] sm:$0xff]  ;;  %v88_v18 = vpack.c.bf16 %v74_v15, %v73_v14  ;;  %v697_v22 = vld [vmem:[#allocation7 + $0x28] sm:$0xff] }
  0x16   :  { %v92_v19 = vpack.c.bf16 %v82_v17, %v81_v16  ;;  %v699_v20 = vld [vmem:[#allocation7 + $0x38] sm:$0xff]  ;;  %v698_v21 = vld [vmem:[#allocation7 + $0x30] sm:$0xff]  ;;  %v75_v23 = vld [vmem:[#allocation2 + $0x20] sm:$0xff] }
  0x17   :  { %519 = vmatpush.bf16.msra.mxu1 %v699_v20  ;;  %708 = vmatpush.bf16.msra.mxu3 %v699_v20  ;;  %v76_v24 = vld [vmem:[#allocation2 + $0x28] sm:$0xff]  ;;  %v83_v25 = vld [vmem:[#allocation2 + $0x60] sm:$0xff]  ;;  %v77_v30 = vld [vmem:[#allocation2 + $0x30] sm:$0xff] }
  0x18   :  { %v84_v26 = vld [vmem:[#allocation2 + $0x68] sm:$0xff]  ;;  %v696_v27 = vld [vmem:[#allocation7 + $0x20] sm:$0xff]  ;;  %v89_v28 = vpack.c.bf16 %v76_v24, %v75_v23  ;;  %v78_v31 = vld [vmem:[#allocation2 + $0x38] sm:$0xff] }
  0x19   :  { %165 = vmatpush.bf16.msra.mxu0 %v689_v2  ;;  %702 = vmatpush.bf16.msra.mxu2 %v689_v2  ;;  %v93_v29 = vpack.c.bf16 %v84_v26, %v83_v25  ;;  %v85_v32 = vld [vmem:[#allocation2 + $0x70] sm:$0xff]  ;;  %v86_v33 = vld [vmem:[#allocation2 + $0x78] sm:$0xff]  ;;  %v90_v34 = vpack.c.bf16 %v78_v31, %v77_v30  ;;  %v693_v38 = vld [vmem:[#allocation7 + $0x8] sm:$0xff] }
  0x1a   :  { %v94_v35 = vpack.c.bf16 %v86_v33, %v85_v32  ;;  %v695_v36 = vld [vmem:[#allocation7 + $0x18] sm:$0xff]  ;;  %v694_v37 = vld [vmem:[#allocation7 + $0x10] sm:$0xff]  ;;  %v692_v39 = vld [vmem:[#allocation7] sm:$0xff] }
  0x1b   :  { %520 = vmatpush.bf16.msra.mxu1 %v698_v21  ;;  %709 = vmatpush.bf16.msra.mxu3 %v698_v21  ;;  %v920_v41 = vld [vmem:[%s954_s2] ss:$0 sm:$0xff]  ;;  %s862_s2 = smov [#allocation9]  }
  0x1c   :  { %s602_s15 = sshll.u32 %s862_s2, 4  ;;  %s603_s15 = int_to_ptr.vmem [resolvable:$true] %s602_s15 }
  0x1d   :  { %166 = vmatpush.bf16.msra.mxu0 %v688_v3  ;;  %703 = vmatpush.bf16.msra.mxu2 %v688_v3 }
  0x1f   :  { %521 = vmatpush.bf16.msra.mxu1 %v697_v22  ;;  %710 = vmatpush.bf16.msra.mxu3 %v697_v22 }
  0x21   :  { %167 = vmatpush.bf16.msra.mxu0 %v687_v4  ;;  %704 = vmatpush.bf16.msra.mxu2 %v687_v4 }
  0x23   :  { %522 = vmatpush.bf16.msra.mxu1 %v696_v27  ;;  %711 = vmatpush.bf16.msra.mxu3 %v696_v27 }
  0x25   :  { %168 = vmatpush.bf16.msra.mxu0 %v686_v5  ;;  %705 = vmatpush.bf16.msra.mxu2 %v686_v5 }
  0x27   :  { %523 = vmatpush.bf16.msra.mxu1 %v695_v36  ;;  %712 = vmatpush.bf16.msra.mxu3 %v695_v36 }
  0x29   :  { %169 = vmatpush.bf16.msra.mxu0 %v685_v6  ;;  %706 = vmatpush.bf16.msra.mxu2 %v685_v6 }
  0x2b   :  { %524 = vmatpush.bf16.msra.mxu1 %v694_v37  ;;  %713 = vmatpush.bf16.msra.mxu3 %v694_v37 }
  0x2d   :  { %170 = vmatpush.bf16.msra.mxu0 %v684_v7  ;;  %707 = vmatpush.bf16.msra.mxu2 %v684_v7 }
  0x2f   :  { %525 = vmatpush.bf16.msra.mxu1 %v693_v38  ;;  %714 = vmatpush.bf16.msra.mxu3 %v693_v38 }
  0x30   :  { %171 = vmatmul.bf16.vlgmr.msra.gmra.mxu0 %v87_v12  ;;  %191 = vmatmul.bf16.vlgmr.msra.gmra.mxu2 %v91_v13 }
  0x33   :  { %526 = vmatpush.bf16.msra.mxu1 %v692_v39  ;;  %715 = vmatpush.bf16.msra.mxu3 %v692_v39 }
  0x40   :  { %176 = vmatmul.bf16.gmra.mxu0 %v88_v18  ;;  %196 = vmatmul.bf16.gmra.mxu2 %v92_v19 }
  0x50   :  { %181 = vmatmul.bf16.gmra.mxu0 %v89_v28  ;;  %201 = vmatmul.bf16.gmra.mxu2 %v93_v29 }
  0x60   :  { %186 = vmatmul.bf16.gmra.mxu0 %v90_v34  ;;  %206 = vmatmul.bf16.gmra.mxu2 %v94_v35 }
  0xad   :  { %v172_v40 = vpop.f32.mrf.mxu0 }
  0xae   :  { %v173_v42 = vadd.f32 %v920_v41, %v172_v40 }
  0xb0   :  { %v267_v44 = vsub.f32 %v173_v42, %v911_v8  ;;  %v427_v46 = vmax.f32 %v173_v42, 0.0 }
  0xb2   :  { %v331_v48 = vmul.f32 %v267_v44, %v267_v44 }
  0xb3   :  { %v192_v43 = vpop.f32.mrf.mxu2 }
  0xb4   :  { %v193_v51 = vadd.f32 %v920_v41, %v192_v43 }
  0xb5   :  { %v174_v45 = vpop.f32.mrf.mxu0 }
  0xb6   :  { %v175_v47 = vadd.f32 %v920_v41, %v174_v45  ;;  %v435_v58 = vmax.f32 %v193_v51, 0.0  ;;  %v726_v45 = vld [vmem:[%s956_s4] ss:$0 sm:$0xff]  ;;  %s863_s4 = smov [#allocation8]  }
  0xb7   :  { %s588_s6 = sshll.u32 %s863_s4, 4  ;;  %s589_s6 = int_to_ptr.vmem [resolvable:$true] %s588_s6 }
  0xb8   :  { %v268_v49 = vsub.f32 %v175_v47, %v913_v9  ;;  %v428_v50 = vmax.f32 %v175_v47, 0.0 }
  0xba   :  { %v332_v52 = vmul.f32 %v268_v49, %v268_v49  ;;  %v443_v53 = vpack.c.bf16 %v428_v50, %v427_v46 }
  0xbb   :  { %v194_v54 = vpop.f32.mrf.mxu2 }
  0xbc   :  { %v347_v55 = vadd.f32 %v332_v52, %v331_v48  ;;  %v195_v56 = vadd.f32 %v920_v41, %v194_v54  ;;  %527 = vmatmul.bf16.vlgmr.msra.gmra.mxu1 %v443_v53 }
  0xbd   :  { %v177_v57 = vpop.f32.mrf.mxu0 }
  0xbe   :  { %v362_v59 = vrot.slane %v347_v55, 4  ;;  %v436_v60 = vmax.f32 %v195_v56, 0.0  ;;  %v178_v0 = vadd.f32 %v920_v41, %v177_v57 }
  0xc0   :  { %v363_v61 = vadd.f32 %v362_v59, %v347_v55  ;;  %v447_v62 = vpack.c.bf16 %v436_v60, %v435_v58  ;;  %v429_v4 = vmax.f32 %v178_v0, 0.0 }
  0xc2   :  { %v364_v63 = vrot.slane %v363_v61, 2  ;;  %547 = vmatmul.bf16.vlgmr.msra.gmra.mxu3 %v447_v62 }
  0xc3   :  { %v197_v1 = vpop.f32.mrf.mxu2 }
  0xc4   :  { %v365_v2 = vadd.f32 %v364_v63, %v363_v61  ;;  %v198_v9 = vadd.f32 %v920_v41, %v197_v1 }
  0xc5   :  { %v179_v3 = vpop.f32.mrf.mxu0 }
  0xc6   :  { %v180_v5 = vadd.f32 %v920_v41, %v179_v3  ;;  %v366_v6 = vrot.slane %v365_v2, 1  ;;  %v437_v14 = vmax.f32 %v198_v9, 0.0 }
  0xc8   :  { %v430_v7 = vmax.f32 %v180_v5, 0.0  ;;  %v367_v8 = vadd.f32 %v366_v6, %v365_v2 }
  0xca   :  { %v444_v10 = vpack.c.bf16 %v430_v7, %v429_v4  ;;  %368 = vst [vmem:[#allocation9] sm:$0x1] %v367_v8 }
  0xcb   :  { %v199_v11 = vpop.f32.mrf.mxu2  ;;  %607 = dma.vmem_to_hbm [thread:$0]  %s603_s15, 16, %s605_s18, [#allocation10]  }
  0xcc   :  { %v200_v12 = vadd.f32 %v920_v41, %v199_v11  ;;  %532 = vmatmul.bf16.gmra.mxu1 %v444_v10 }
  0xcd   :  { %v182_v13 = vpop.f32.mrf.mxu0 }
  0xce   :  { %v438_v15 = vmax.f32 %v200_v12, 0.0  ;;  %v183_v17 = vadd.f32 %v920_v41, %v182_v13 }
  0xd0   :  { %v448_v16 = vpack.c.bf16 %v438_v15, %v437_v14  ;;  %v431_v20 = vmax.f32 %v183_v17, 0.0 }
  0xd2   :  { %552 = vmatmul.bf16.gmra.mxu3 %v448_v16 }
  0xd3   :  { %v202_v18 = vpop.f32.mrf.mxu2 }
  0xd4   :  { %v203_v23 = vadd.f32 %v920_v41, %v202_v18 }
  0xd5   :  { %v184_v19 = vpop.f32.mrf.mxu0 }
  0xd6   :  { %v185_v21 = vadd.f32 %v920_v41, %v184_v19  ;;  %v439_v28 = vmax.f32 %v203_v23, 0.0 }
  0xd8   :  { %v432_v22 = vmax.f32 %v185_v21, 0.0 }
  0xda   :  { %v445_v24 = vpack.c.bf16 %v432_v22, %v431_v20 }
  0xdb   :  { %v204_v25 = vpop.f32.mrf.mxu2 }
  0xdc   :  { %v205_v26 = vadd.f32 %v920_v41, %v204_v25  ;;  %537 = vmatmul.bf16.gmra.mxu1 %v445_v24 }
  0xdd   :  { %v187_v27 = vpop.f32.mrf.mxu0 }
  0xde   :  { %v440_v29 = vmax.f32 %v205_v26, 0.0  ;;  %v188_v31 = vadd.f32 %v920_v41, %v187_v27 }
  0xe0   :  { %v449_v30 = vpack.c.bf16 %v440_v29, %v439_v28  ;;  %v433_v34 = vmax.f32 %v188_v31, 0.0 }
  0xe2   :  { %557 = vmatmul.bf16.gmra.mxu3 %v449_v30 }
  0xe3   :  { %v207_v32 = vpop.f32.mrf.mxu2 }
  0xe4   :  { %v208_v37 = vadd.f32 %v920_v41, %v207_v32 }
  0xe5   :  { %v189_v33 = vpop.f32.mrf.mxu0 }
  0xe6   :  { %v190_v35 = vadd.f32 %v920_v41, %v189_v33  ;;  %v441_v42 = vmax.f32 %v208_v37, 0.0 }
  0xe8   :  { %v434_v36 = vmax.f32 %v190_v35, 0.0 }
  0xea   :  { %v446_v38 = vpack.c.bf16 %v434_v36, %v433_v34 }
  0xeb   :  { %v209_v39 = vpop.f32.mrf.mxu2 }
  0xec   :  { %v210_v40 = vadd.f32 %v920_v41, %v209_v39  ;;  %542 = vmatmul.bf16.gmra.mxu1 %v446_v38 }
  0xee   :  { %v442_v43 = vmax.f32 %v210_v40, 0.0 }
  0xf0   :  { %v450_v44 = vpack.c.bf16 %v442_v43, %v441_v42 }
  0xf2   :  { %562 = vmatmul.bf16.gmra.mxu3 %v450_v44 }
 0x139   :  { %v528_v46 = vpop.f32.mrf.mxu1 }
 0x13a   :  { %v529_v41 = vadd.f32 %v726_v45, %v528_v46 }
 0x13c   :  { %568 = vst [vmem:[#allocation8] sm:$0xff] %v529_v41 }
 0x141   :  { %v530_v47 = vpop.f32.mrf.mxu1 }
 0x142   :  { %v531_v48 = vadd.f32 %v726_v45, %v530_v47 }
 0x144   :  { %569 = vst [vmem:[#allocation8 + $0x8] sm:$0xff] %v531_v48 }
 0x145   :  { %v548_v49 = vpop.f32.mrf.mxu3 }
 0x146   :  { %v549_v50 = vadd.f32 %v726_v45, %v548_v49 }
 0x148   :  { %576 = vst [vmem:[#allocation8 + $0x40] sm:$0xff] %v549_v50 }
 0x149   :  { %v533_v51 = vpop.f32.mrf.mxu1 }
 0x14a   :  { %v534_v52 = vadd.f32 %v726_v45, %v533_v51 }
 0x14c   :  { %570 = vst [vmem:[#allocation8 + $0x10] sm:$0xff] %v534_v52 }
 0x14d   :  { %v550_v53 = vpop.f32.mrf.mxu3 }
 0x14e   :  { %v551_v54 = vadd.f32 %v726_v45, %v550_v53 }
 0x150   :  { %577 = vst [vmem:[#allocation8 + $0x48] sm:$0xff] %v551_v54 }
 0x151   :  { %v535_v55 = vpop.f32.mrf.mxu1 }
 0x152   :  { %v536_v56 = vadd.f32 %v726_v45, %v535_v55 }
 0x154   :  { %571 = vst [vmem:[#allocation8 + $0x18] sm:$0xff] %v536_v56 }
 0x155   :  { %v553_v57 = vpop.f32.mrf.mxu3 }
 0x156   :  { %v554_v58 = vadd.f32 %v726_v45, %v553_v57 }
 0x158   :  { %578 = vst [vmem:[#allocation8 + $0x50] sm:$0xff] %v554_v58 }
 0x159   :  { %v538_v59 = vpop.f32.mrf.mxu1 }
 0x15a   :  { %v539_v60 = vadd.f32 %v726_v45, %v538_v59 }
 0x15c   :  { %572 = vst [vmem:[#allocation8 + $0x20] sm:$0xff] %v539_v60 }
 0x15d   :  { %v555_v61 = vpop.f32.mrf.mxu3 }
 0x15e   :  { %v556_v62 = vadd.f32 %v726_v45, %v555_v61 }
 0x160   :  { %579 = vst [vmem:[#allocation8 + $0x58] sm:$0xff] %v556_v62 }
 0x161   :  { %v540_v63 = vpop.f32.mrf.mxu1 }
 0x162   :  { %v541_v0 = vadd.f32 %v726_v45, %v540_v63 }
 0x164   :  { %573 = vst [vmem:[#allocation8 + $0x28] sm:$0xff] %v541_v0 }
 0x165   :  { %v558_v1 = vpop.f32.mrf.mxu3 }
 0x166   :  { %v559_v2 = vadd.f32 %v726_v45, %v558_v1 }
 0x168   :  { %580 = vst [vmem:[#allocation8 + $0x60] sm:$0xff] %v559_v2 }
 0x169   :  { %v543_v3 = vpop.f32.mrf.mxu1 }
 0x16a   :  { %v544_v4 = vadd.f32 %v726_v45, %v543_v3 }
 0x16c   :  { %574 = vst [vmem:[#allocation8 + $0x30] sm:$0xff] %v544_v4 }
 0x16d   :  { %v560_v5 = vpop.f32.mrf.mxu3 }
 0x16e   :  { %v561_v6 = vadd.f32 %v726_v45, %v560_v5 }
 0x170   :  { %581 = vst [vmem:[#allocation8 + $0x68] sm:$0xff] %v561_v6 }
 0x171   :  { %v545_v7 = vpop.f32.mrf.mxu1 }
 0x172   :  { %v546_v8 = vadd.f32 %v726_v45, %v545_v7 }
 0x174   :  { %575 = vst [vmem:[#allocation8 + $0x38] sm:$0xff] %v546_v8 }
 0x175   :  { %v563_v9 = vpop.f32.mrf.mxu3 }
 0x176   :  { %v564_v10 = vadd.f32 %v726_v45, %v563_v9 }
 0x178   :  { %582 = vst [vmem:[#allocation8 + $0x70] sm:$0xff] %v564_v10 }
 0x17d   :  { %v565_v11 = vpop.f32.mrf.mxu3 }
 0x17e   :  { %v566_v12 = vadd.f32 %v726_v45, %v565_v11 }
 0x180   :  { %583 = vst [vmem:[#allocation8 + $0x78] sm:$0xff] %v566_v12 }
 0x181   :  { %596 = dma.vmem_to_hbm [thread:$0]  %s589_s6, 2048, %s591_s23, [#allocation4], %s859_s9, %s859_s9, %s860_s10  }
 0x182   :  { %851 = dma.done.wait [#allocation4], 2048  }
 0x183   :  { %852 = vsyncadd [#allocation4], 4294965248 }
 0x184   :  { %853 = dma.done.wait [#allocation10], 16  }
 0x185   :  { %854 = vsyncadd [#allocation10], 4294967280 }
 0x186   :  { %616 = vsyncpa [#allocation3], 1 }
 0x187   :  { %617 = vsyncpa [#allocation6], 1 }
 0x188   :  { %618 = vsyncpa [#allocation4], 1 }
 0x189   :  { %619 = vsyncpa [#allocation10], 1 }

</bundles_post_ra>
